<compile_context>
chip_gen: v7x
topology: tpu7x:2x2x1
jax: 0.10.0
libtpu: 0.0.40
codegen_flags: <defaults>
</compile_context>

<pallas_src>
import jax
import jax.numpy as jnp
from jax import lax
from jax.experimental import pallas as pl
from jax.experimental.pallas import tpu as pltpu

KSIZE = 3


def _pick_c_chunk(C, itemsize):
    """Sublane-aligned channel chunk (f32 -> 8, bf16 -> 16, int8 -> 32)."""
    align = max(8, 32 // max(int(itemsize), 1))
    if C <= align:
        return C
    cap = 4 * align                      # keep the live chunk modest
    return min(cap, (C // align) * align)


def _tap_masks(H, W):
    """Host-side per-tap validity masks, shape (9, H*W), 1.0 valid / 0.0 pad."""
    hh = jnp.arange(H, dtype=jnp.int32)[:, None]
    ww = jnp.arange(W, dtype=jnp.int32)[None, :]
    rows = []
    for dh in (-1, 0, 1):
        for dw in (-1, 0, 1):
            valid = ((hh + dh >= 0) & (hh + dh < H) &
                     (ww + dw >= 0) & (ww + dw < W))
            rows.append(valid.reshape(-1))
    return jnp.stack(rows).astype(jnp.float32)


def _make_kernel(C, H, W, c_chunk, unroll=2):
    HW = H * W
    n_full = C // c_chunk
    rem = C - n_full * c_chunk
    lane_aligned = (HW % 128 == 0)

    def _shift(a, shift):
        # result[..., i] = a[..., i + shift]; wrapped lanes are zeroed by masks.
        if shift == 0:
            return a
        amt = (-shift) % HW
        if lane_aligned:
            return pltpu.roll(a, amt, 1)          # XLU lane rotate
        return jnp.roll(a, amt, axis=1)           # generic fallback

    def kernel(w_ref, m_ref, x_ref, o_ref):
        # w_ref : SMEM (18,)   conv weights [max-branch(9), avg-branch*(1/C)(9)]
        # m_ref : VMEM (9, HW) per-tap validity masks
        # x_ref : VMEM (nb, C, HW)
        # o_ref : VMEM (nb, C, HW)
        nb = x_ref.shape[0]

        # ---- streamed channel reduction: running max (native) + sum (f32) ----
        ch0 = x_ref[:, 0:c_chunk, :]
        run_max = jnp.max(ch0, axis=1)                         # native dtype
        run_sum = jnp.sum(ch0.astype(jnp.float32), axis=1)     # f32

        if n_full > 1:
            def red_body(i, carry):
                rmax, rsum = carry
                c0 = pl.multiple_of(i * c_chunk, c_chunk)
                ch = x_ref[:, pl.ds(c0, c_chunk), :]
                rmax = jnp.maximum(rmax, jnp.max(ch, axis=1))
                rsum = rsum + jnp.sum(ch.astype(jnp.float32), axis=1)
                return rmax, rsum
            run_max, run_sum = lax.fori_loop(
                1, n_full, red_body, (run_max, run_sum), unroll=unroll)

        if rem:
            tail = x_ref[:, C - rem:C, :]
            run_max = jnp.maximum(run_max, jnp.max(tail, axis=1))
            run_sum = run_sum + jnp.sum(tail.astype(jnp.float32), axis=1)

        run_max_f = run_max.astype(jnp.float32)

        # ---- 3x3 "SAME" conv over [max, sum/C] as 9 lane shifts + masks ------
        acc = jnp.zeros((nb, HW), jnp.float32)
        for kh in range(KSIZE):
            dh = kh - 1
            for kw in range(KSIZE):
                dw = kw - 1
                k = kh * KSIZE + kw
                shift = dh * W + dw
                sm = _shift(run_max_f, shift)
                ss = _shift(run_sum, shift)
                tap = w_ref[k] * sm + w_ref[KSIZE * KSIZE + k] * ss
                if (dh, dw) != (0, 0):
                    tap = tap * m_ref[k][None, :]
                acc = acc + tap

        attn = jax.nn.sigmoid(acc)                       # (nb, HW) f32
        attn_x = attn.astype(o_ref.dtype)[:, None, :]    # (nb, 1, HW), one cast

        # ---- gating: re-read x in chunks, lane-dense unmasked stores ---------
        o_ref[:, 0:c_chunk, :] = (attn_x * x_ref[:, 0:c_chunk, :]).astype(o_ref.dtype)
        if n_full > 1:
            def gate_body(i, carry):
                c0 = pl.multiple_of(i * c_chunk, c_chunk)
                xin = x_ref[:, pl.ds(c0, c_chunk), :]
                o_ref[:, pl.ds(c0, c_chunk), :] = (attn_x * xin).astype(o_ref.dtype)
                return carry
            lax.fori_loop(1, n_full, gate_body, jnp.int32(0), unroll=unroll)
        if rem:
            o_ref[:, C - rem:C, :] = (attn_x * x_ref[:, C - rem:C, :]).astype(o_ref.dtype)

    return kernel


def spatial_attention(x, weight, *, target_block_bytes=8 << 20):
    """x: (N, C, H, W); weight: (1, 2, 3, 3) OIHW, input ch 0 = max, ch 1 = avg."""
    N, C, H, W = x.shape
    HW = H * W

    # Fold the 1/C of the channel mean into the avg-branch conv weights.
    w2 = weight.astype(jnp.float32).reshape(2, KSIZE * KSIZE)
    w2 = w2.at[1].multiply(1.0 / C)
    w_flat = w2.reshape(-1)                         # (18,) -> SMEM

    masks = _tap_masks(H, W)                        # (9, HW) -> resident VMEM

    # Lane-dense layout (free, contiguous reshape).
    x_flat = x.reshape(N, C, HW)

    # Batch fusion per grid step: up to target_block_bytes per block, but keep
    # >= 2 grid steps whenever N >= 2 so v7x's two TensorCores both get work
    # and the software pipeline can overlap DMA with compute.
    per_image_bytes = C * HW * x.dtype.itemsize
    nb = max(1, min(N, target_block_bytes // max(per_image_bytes, 1)))
    if N >= 2:
        nb = min(nb, max(1, N // 2))
    while N % nb:
        nb -= 1
    # TODO(synk): tile H*W along H with a 1-row halo (second grid axis) when a
    # single image exceeds the per-block budget — needed for very large images
    # on v7x's 64 MiB VMEM and to lengthen the grid for small-N shapes.

    c_chunk = _pick_c_chunk(C, x.dtype.itemsize)
    block_bytes = nb * per_image_bytes
    # 2x(in) + 2x(out) double buffers + f32 working maps; stay well under the
    # 64 MiB physical VMEM of a v7x TensorCore, well above v5e's 16 MiB default.
    vmem_limit = int(min(56 << 20, max(32 << 20, 6 * block_bytes + (4 << 20))))

    kernel = _make_kernel(C, H, W, c_chunk)
    out = pl.pallas_call(
        kernel,
        out_shape=jax.ShapeDtypeStruct((N, C, HW), x.dtype),
        grid=(N // nb,),
        in_specs=[
            pl.BlockSpec(memory_space=pltpu.MemorySpace.SMEM),   # conv weights
            pl.BlockSpec((9, HW), lambda n: (0, 0)),             # tap masks
            pl.BlockSpec((nb, C, HW), lambda n: (n, 0, 0)),      # x block
        ],
        out_specs=pl.BlockSpec((nb, C, HW), lambda n: (n, 0, 0)),
        compiler_params=pltpu.CompilerParams(
            dimension_semantics=("parallel",),     # batch steps are independent
            vmem_limit_bytes=vmem_limit,
        ),
    )(w_flat, masks, x_flat)
    return out.reshape(N, C, H, W)


def spatial_attention_reference(x, weight):
    """Pure-JAX reference mirroring the PyTorch forward pass."""
    ch_max = jnp.max(x, axis=1, keepdims=True)
    ch_avg = jnp.mean(x, axis=1, keepdims=True)
    pool = jnp.concatenate([ch_max, ch_avg], axis=1)   # torch.cat([max, avg])
    out = jax.lax.conv_general_dilated(
        pool, weight, window_strides=(1, 1), padding="SAME",
        dimension_numbers=("NCHW", "OIHW", "NCHW"))
    return jax.nn.sigmoid(out) * x


if __name__ == "__main__":
    key = jax.random.PRNGKey(0)
    kx, kw = jax.random.split(key)
    weight = jax.random.normal(kw, (1, 2, KSIZE, KSIZE), dtype=jnp.float32) * 0.1

    # Primary small shape (module-consistent).
    N, C, H, W = 2, 4, 16, 16
    x = jax.random.normal(kx, (N, C, H, W), dtype=jnp.float32)
    out = jax.block_until_ready(spatial_attention(x, weight))
    ref = spatial_attention_reference(x, weight)
    assert out.shape == (N, C, H, W), out.shape
    assert jnp.allclose(out, ref, atol=1e-5, rtol=1e-5), "mismatch (2,4,16,16)"

    # Extra coverage: non-square spatial dims, and C large enough to exercise
    # the fori_loop chunked reduction/gating plus a static tail chunk.
    for shp in ((2, 6, 8, 32), (2, 80, 16, 16)):
        x2 = jax.random.normal(jax.random.PRNGKey(1), shp, dtype=jnp.float32)
        o2 = jax.block_until_ready(spatial_attention(x2, weight))
        r2 = spatial_attention_reference(x2, weight)
        assert jnp.allclose(o2, r2, atol=1e-5, rtol=1e-5), f"mismatch {shp}"

    print("KERNEL_OK")
</pallas_src>

<mosaic_0001>
module attributes {stable_mosaic.version = 11 : i64} {
  func.func @kernel(%arg0: i32, %arg1: memref<18xf32, #tpu.memory_space<smem>>, %arg2: memref<9x256xf32, #tpu.memory_space<vmem>>, %arg3: memref<1x4x256xf32, #tpu.memory_space<vmem>>, %arg4: memref<1x4x256xf32, #tpu.memory_space<vmem>>) attributes {dimension_semantics = [#tpu.dimension_semantics<parallel>], iteration_bounds = array<i64: 2>, scalar_prefetch = 0 : i64, scratch_operands = 0 : i64, tpu.core_type = #tpu.core_type<tc>, window_params = [{transform_indices = @transform_0, window_bounds = array<i64: 18>}, {pipeline_mode = #tpu.pipeline_mode<synchronous>, transform_indices = @transform_1, window_bounds = array<i64: 9, 256>}, {transform_indices = @transform_2, window_bounds = array<i64: 1, 4, 256>}, {transform_indices = @transform_3, window_bounds = array<i64: 1, 4, 256>}]} {
    %c0 = arith.constant 0 : index
    %c0_0 = arith.constant 0 : index
    %c0_1 = arith.constant 0 : index
    %0 = vector.load %arg3[%c0, %c0_0, %c0_1] : memref<1x4x256xf32, #tpu.memory_space<vmem>>, vector<1x4x256xf32>
    %cst = arith.constant dense<0xFF800000> : vector<1x256xf32>
    %1 = vector.multi_reduction <maximumf>, %0, %cst [1] : vector<1x4x256xf32> to vector<1x256xf32>
    %cst_2 = arith.constant dense<0.000000e+00> : vector<1x256xf32>
    %2 = vector.multi_reduction <add>, %0, %cst_2 [1] : vector<1x4x256xf32> to vector<1x256xf32>
    %cst_3 = arith.constant 0.000000e+00 : f32
    %3 = vector.broadcast %cst_3 : f32 to vector<1x256xf32>
    %c17_i32 = arith.constant 17 : i32
    %4 = tpu.dynamic_rotate %1 by %c17_i32 dim 1 : vector<1x256xf32>, i32 -> vector<1x256xf32>
    %c17_i32_4 = arith.constant 17 : i32
    %5 = tpu.dynamic_rotate %2 by %c17_i32_4 dim 1 : vector<1x256xf32>, i32 -> vector<1x256xf32>
    %c0_5 = arith.constant 0 : index
    %6 = memref.load %arg1[%c0_5] : memref<18xf32, #tpu.memory_space<smem>>
    %7 = vector.broadcast %6 : f32 to vector<1x256xf32>
    %8 = arith.mulf %7, %4 : vector<1x256xf32>
    %c9 = arith.constant 9 : index
    %9 = memref.load %arg1[%c9] : memref<18xf32, #tpu.memory_space<smem>>
    %10 = vector.broadcast %9 : f32 to vector<1x256xf32>
    %11 = arith.mulf %10, %5 : vector<1x256xf32>
    %12 = arith.addf %8, %11 : vector<1x256xf32>
    %c0_6 = arith.constant 0 : index
    %c0_7 = arith.constant 0 : index
    %13 = vector.load %arg2[%c0_6, %c0_7] : memref<9x256xf32, #tpu.memory_space<vmem>>, vector<1x256xf32>
    %14 = vector.shape_cast %13 : vector<1x256xf32> to vector<256xf32>
    %15 = vector.shape_cast %14 : vector<256xf32> to vector<1x256xf32>
    %16 = arith.mulf %12, %15 : vector<1x256xf32>
    %17 = arith.addf %3, %16 : vector<1x256xf32>
    %c16_i32 = arith.constant 16 : i32
    %18 = tpu.dynamic_rotate %1 by %c16_i32 dim 1 : vector<1x256xf32>, i32 -> vector<1x256xf32>
    %c16_i32_8 = arith.constant 16 : i32
    %19 = tpu.dynamic_rotate %2 by %c16_i32_8 dim 1 : vector<1x256xf32>, i32 -> vector<1x256xf32>
    %c1 = arith.constant 1 : index
    %20 = memref.load %arg1[%c1] : memref<18xf32, #tpu.memory_space<smem>>
    %21 = vector.broadcast %20 : f32 to vector<1x256xf32>
    %22 = arith.mulf %21, %18 : vector<1x256xf32>
    %c10 = arith.constant 10 : index
    %23 = memref.load %arg1[%c10] : memref<18xf32, #tpu.memory_space<smem>>
    %24 = vector.broadcast %23 : f32 to vector<1x256xf32>
    %25 = arith.mulf %24, %19 : vector<1x256xf32>
    %26 = arith.addf %22, %25 : vector<1x256xf32>
    %c1_9 = arith.constant 1 : index
    %c0_10 = arith.constant 0 : index
    %27 = vector.load %arg2[%c1_9, %c0_10] : memref<9x256xf32, #tpu.memory_space<vmem>>, vector<1x256xf32>
    %28 = vector.shape_cast %27 : vector<1x256xf32> to vector<256xf32>
    %29 = vector.shape_cast %28 : vector<256xf32> to vector<1x256xf32>
    %30 = arith.mulf %26, %29 : vector<1x256xf32>
    %31 = arith.addf %17, %30 : vector<1x256xf32>
    %c15_i32 = arith.constant 15 : i32
    %32 = tpu.dynamic_rotate %1 by %c15_i32 dim 1 : vector<1x256xf32>, i32 -> vector<1x256xf32>
    %c15_i32_11 = arith.constant 15 : i32
    %33 = tpu.dynamic_rotate %2 by %c15_i32_11 dim 1 : vector<1x256xf32>, i32 -> vector<1x256xf32>
    %c2 = arith.constant 2 : index
    %34 = memref.load %arg1[%c2] : memref<18xf32, #tpu.memory_space<smem>>
    %35 = vector.broadcast %34 : f32 to vector<1x256xf32>
    %36 = arith.mulf %35, %32 : vector<1x256xf32>
    %c11 = arith.constant 11 : index
    %37 = memref.load %arg1[%c11] : memref<18xf32, #tpu.memory_space<smem>>
    %38 = vector.broadcast %37 : f32 to vector<1x256xf32>
    %39 = arith.mulf %38, %33 : vector<1x256xf32>
    %40 = arith.addf %36, %39 : vector<1x256xf32>
    %c2_12 = arith.constant 2 : index
    %c0_13 = arith.constant 0 : index
    %41 = vector.load %arg2[%c2_12, %c0_13] : memref<9x256xf32, #tpu.memory_space<vmem>>, vector<1x256xf32>
    %42 = vector.shape_cast %41 : vector<1x256xf32> to vector<256xf32>
    %43 = vector.shape_cast %42 : vector<256xf32> to vector<1x256xf32>
    %44 = arith.mulf %40, %43 : vector<1x256xf32>
    %45 = arith.addf %31, %44 : vector<1x256xf32>
    %c1_i32 = arith.constant 1 : i32
    %46 = tpu.dynamic_rotate %1 by %c1_i32 dim 1 : vector<1x256xf32>, i32 -> vector<1x256xf32>
    %c1_i32_14 = arith.constant 1 : i32
    %47 = tpu.dynamic_rotate %2 by %c1_i32_14 dim 1 : vector<1x256xf32>, i32 -> vector<1x256xf32>
    %c3 = arith.constant 3 : index
    %48 = memref.load %arg1[%c3] : memref<18xf32, #tpu.memory_space<smem>>
    %49 = vector.broadcast %48 : f32 to vector<1x256xf32>
    %50 = arith.mulf %49, %46 : vector<1x256xf32>
    %c12 = arith.constant 12 : index
    %51 = memref.load %arg1[%c12] : memref<18xf32, #tpu.memory_space<smem>>
    %52 = vector.broadcast %51 : f32 to vector<1x256xf32>
    %53 = arith.mulf %52, %47 : vector<1x256xf32>
    %54 = arith.addf %50, %53 : vector<1x256xf32>
    %c3_15 = arith.constant 3 : index
    %c0_16 = arith.constant 0 : index
    %55 = vector.load %arg2[%c3_15, %c0_16] : memref<9x256xf32, #tpu.memory_space<vmem>>, vector<1x256xf32>
    %56 = vector.shape_cast %55 : vector<1x256xf32> to vector<256xf32>
    %57 = vector.shape_cast %56 : vector<256xf32> to vector<1x256xf32>
    %58 = arith.mulf %54, %57 : vector<1x256xf32>
    %59 = arith.addf %45, %58 : vector<1x256xf32>
    %c4 = arith.constant 4 : index
    %60 = memref.load %arg1[%c4] : memref<18xf32, #tpu.memory_space<smem>>
    %61 = vector.broadcast %60 : f32 to vector<1x256xf32>
    %62 = arith.mulf %61, %1 : vector<1x256xf32>
    %c13 = arith.constant 13 : index
    %63 = memref.load %arg1[%c13] : memref<18xf32, #tpu.memory_space<smem>>
    %64 = vector.broadcast %63 : f32 to vector<1x256xf32>
    %65 = arith.mulf %64, %2 : vector<1x256xf32>
    %66 = arith.addf %62, %65 : vector<1x256xf32>
    %67 = arith.addf %59, %66 : vector<1x256xf32>
    %c255_i32 = arith.constant 255 : i32
    %68 = tpu.dynamic_rotate %1 by %c255_i32 dim 1 : vector<1x256xf32>, i32 -> vector<1x256xf32>
    %c255_i32_17 = arith.constant 255 : i32
    %69 = tpu.dynamic_rotate %2 by %c255_i32_17 dim 1 : vector<1x256xf32>, i32 -> vector<1x256xf32>
    %c5 = arith.constant 5 : index
    %70 = memref.load %arg1[%c5] : memref<18xf32, #tpu.memory_space<smem>>
    %71 = vector.broadcast %70 : f32 to vector<1x256xf32>
    %72 = arith.mulf %71, %68 : vector<1x256xf32>
    %c14 = arith.constant 14 : index
    %73 = memref.load %arg1[%c14] : memref<18xf32, #tpu.memory_space<smem>>
    %74 = vector.broadcast %73 : f32 to vector<1x256xf32>
    %75 = arith.mulf %74, %69 : vector<1x256xf32>
    %76 = arith.addf %72, %75 : vector<1x256xf32>
    %c5_18 = arith.constant 5 : index
    %c0_19 = arith.constant 0 : index
    %77 = vector.load %arg2[%c5_18, %c0_19] : memref<9x256xf32, #tpu.memory_space<vmem>>, vector<1x256xf32>
    %78 = vector.shape_cast %77 : vector<1x256xf32> to vector<256xf32>
    %79 = vector.shape_cast %78 : vector<256xf32> to vector<1x256xf32>
    %80 = arith.mulf %76, %79 : vector<1x256xf32>
    %81 = arith.addf %67, %80 : vector<1x256xf32>
    %c241_i32 = arith.constant 241 : i32
    %82 = tpu.dynamic_rotate %1 by %c241_i32 dim 1 : vector<1x256xf32>, i32 -> vector<1x256xf32>
    %c241_i32_20 = arith.constant 241 : i32
    %83 = tpu.dynamic_rotate %2 by %c241_i32_20 dim 1 : vector<1x256xf32>, i32 -> vector<1x256xf32>
    %c6 = arith.constant 6 : index
    %84 = memref.load %arg1[%c6] : memref<18xf32, #tpu.memory_space<smem>>
    %85 = vector.broadcast %84 : f32 to vector<1x256xf32>
    %86 = arith.mulf %85, %82 : vector<1x256xf32>
    %c15 = arith.constant 15 : index
    %87 = memref.load %arg1[%c15] : memref<18xf32, #tpu.memory_space<smem>>
    %88 = vector.broadcast %87 : f32 to vector<1x256xf32>
    %89 = arith.mulf %88, %83 : vector<1x256xf32>
    %90 = arith.addf %86, %89 : vector<1x256xf32>
    %c6_21 = arith.constant 6 : index
    %c0_22 = arith.constant 0 : index
    %91 = vector.load %arg2[%c6_21, %c0_22] : memref<9x256xf32, #tpu.memory_space<vmem>>, vector<1x256xf32>
    %92 = vector.shape_cast %91 : vector<1x256xf32> to vector<256xf32>
    %93 = vector.shape_cast %92 : vector<256xf32> to vector<1x256xf32>
    %94 = arith.mulf %90, %93 : vector<1x256xf32>
    %95 = arith.addf %81, %94 : vector<1x256xf32>
    %c240_i32 = arith.constant 240 : i32
    %96 = tpu.dynamic_rotate %1 by %c240_i32 dim 1 : vector<1x256xf32>, i32 -> vector<1x256xf32>
    %c240_i32_23 = arith.constant 240 : i32
    %97 = tpu.dynamic_rotate %2 by %c240_i32_23 dim 1 : vector<1x256xf32>, i32 -> vector<1x256xf32>
    %c7 = arith.constant 7 : index
    %98 = memref.load %arg1[%c7] : memref<18xf32, #tpu.memory_space<smem>>
    %99 = vector.broadcast %98 : f32 to vector<1x256xf32>
    %100 = arith.mulf %99, %96 : vector<1x256xf32>
    %c16 = arith.constant 16 : index
    %101 = memref.load %arg1[%c16] : memref<18xf32, #tpu.memory_space<smem>>
    %102 = vector.broadcast %101 : f32 to vector<1x256xf32>
    %103 = arith.mulf %102, %97 : vector<1x256xf32>
    %104 = arith.addf %100, %103 : vector<1x256xf32>
    %c7_24 = arith.constant 7 : index
    %c0_25 = arith.constant 0 : index
    %105 = vector.load %arg2[%c7_24, %c0_25] : memref<9x256xf32, #tpu.memory_space<vmem>>, vector<1x256xf32>
    %106 = vector.shape_cast %105 : vector<1x256xf32> to vector<256xf32>
    %107 = vector.shape_cast %106 : vector<256xf32> to vector<1x256xf32>
    %108 = arith.mulf %104, %107 : vector<1x256xf32>
    %109 = arith.addf %95, %108 : vector<1x256xf32>
    %c239_i32 = arith.constant 239 : i32
    %110 = tpu.dynamic_rotate %1 by %c239_i32 dim 1 : vector<1x256xf32>, i32 -> vector<1x256xf32>
    %c239_i32_26 = arith.constant 239 : i32
    %111 = tpu.dynamic_rotate %2 by %c239_i32_26 dim 1 : vector<1x256xf32>, i32 -> vector<1x256xf32>
    %c8 = arith.constant 8 : index
    %112 = memref.load %arg1[%c8] : memref<18xf32, #tpu.memory_space<smem>>
    %113 = vector.broadcast %112 : f32 to vector<1x256xf32>
    %114 = arith.mulf %113, %110 : vector<1x256xf32>
    %c17 = arith.constant 17 : index
    %115 = memref.load %arg1[%c17] : memref<18xf32, #tpu.memory_space<smem>>
    %116 = vector.broadcast %115 : f32 to vector<1x256xf32>
    %117 = arith.mulf %116, %111 : vector<1x256xf32>
    %118 = arith.addf %114, %117 : vector<1x256xf32>
    %c8_27 = arith.constant 8 : index
    %c0_28 = arith.constant 0 : index
    %119 = vector.load %arg2[%c8_27, %c0_28] : memref<9x256xf32, #tpu.memory_space<vmem>>, vector<1x256xf32>
    %120 = vector.shape_cast %119 : vector<1x256xf32> to vector<256xf32>
    %121 = vector.shape_cast %120 : vector<256xf32> to vector<1x256xf32>
    %122 = arith.mulf %118, %121 : vector<1x256xf32>
    %123 = arith.addf %109, %122 : vector<1x256xf32>
    %124 = arith.negf %123 : vector<1x256xf32>
    %125 = math.exp %124 : vector<1x256xf32>
    %cst_29 = arith.constant 1.000000e+00 : f32
    %126 = vector.broadcast %cst_29 : f32 to vector<1x256xf32>
    %127 = arith.addf %126, %125 : vector<1x256xf32>
    %128 = arith.divf %126, %127 : vector<1x256xf32>
    %129 = vector.shape_cast %128 : vector<1x256xf32> to vector<1x1x256xf32>
    %c0_30 = arith.constant 0 : index
    %c0_31 = arith.constant 0 : index
    %c0_32 = arith.constant 0 : index
    %130 = vector.load %arg3[%c0_30, %c0_31, %c0_32] : memref<1x4x256xf32, #tpu.memory_space<vmem>>, vector<1x4x256xf32>
    %131 = vector.broadcast %129 : vector<1x1x256xf32> to vector<1x4x256xf32>
    %132 = arith.mulf %131, %130 : vector<1x4x256xf32>
    %c0_33 = arith.constant 0 : index
    %c0_34 = arith.constant 0 : index
    %c0_35 = arith.constant 0 : index
    %133 = vector.load %arg4[%c0_33, %c0_34, %c0_35] : memref<1x4x256xf32, #tpu.memory_space<vmem>>, vector<1x4x256xf32>
    tpu.vector_store %arg4[%c0_33, %c0_34, %c0_35], %132 {strides = array<i32>} : memref<1x4x256xf32, #tpu.memory_space<vmem>>, vector<1x4x256xf32>,
    return
  }
  func.func @transform_0(%arg0: i32) -> i32 {
    %c0_i32 = arith.constant 0 : i32
    %c0_i32_0 = arith.constant 0 : i32
    return %c0_i32 : i32
  }
  func.func @transform_1(%arg0: i32) -> (i32, i32) {
    %c0_i32 = arith.constant 0 : i32
    %c0_i32_0 = arith.constant 0 : i32
    %c0_i32_1 = arith.constant 0 : i32
    return %c0_i32, %c0_i32_0 : i32, i32
  }
  func.func @transform_2(%arg0: i32) -> (i32, i32, i32) {
    %c0_i32 = arith.constant 0 : i32
    %c0_i32_0 = arith.constant 0 : i32
    %c0_i32_1 = arith.constant 0 : i32
    return %arg0, %c0_i32, %c0_i32_0 : i32, i32, i32
  }
  func.func @transform_3(%arg0: i32) -> (i32, i32, i32) {
    %c0_i32 = arith.constant 0 : i32
    %c0_i32_0 = arith.constant 0 : i32
    %c0_i32_1 = arith.constant 0 : i32
    return %arg0, %c0_i32, %c0_i32_0 : i32, i32, i32
  }
}

</mosaic_0001>

<bundles_post_ra>
// kernel: tpu_custom_call.1
= control target key start
LH: loop header
LB: loop body
LE: loop exit
PB: predicated region body
PF: predicated region fallthrough
CT: control target
= control target key end

     0   :  { %8 = vsyncpa [#allocation5], 0  ;;  %s1496_s0 = inlined_call_operand.hbm [shape: f32[18], index: 0, kind: input, shape index: {}]   ;;  %s1497_s1 = inlined_call_operand.hbm [shape: f32[9,256], index: 1, kind: input, shape index: {}]   ;;  %s1498_s2 = inlined_call_operand.hbm [shape: f32[2,4,256], index: 2, kind: input, shape index: {}]   ;;  %s1499_s3 = inlined_call_operand.hbm [shape: f32[2,4,256], index: 3, kind: output, shape index: {}]  }
   0x1   :  { %9 = vsyncpa [#allocation3], 0 }
   0x2   :  { %10 = vsyncpa [#allocation8], 0 }
   0x3   :  { %12 = vsyncpa [#allocation8 + $0x1], 0 }
   0x4   :  { %13 = vsyncpa [#allocation4], 0 }
   0x5   :  { %15 = vsyncpa [#allocation4 + $0x1], 0  ;;  %s1022_s12 = smov 0   ;;  %s1024_s13 = smov 0  }
   0x6   :  { %s1026_s14 = smov 0   ;;  %s1028_s15 = smov 0  }
   0x7 LB: > { %s1043_s16 = sadd.s32 4294967295, %s986_s15   ;;  %s716_s17 = sadd.s32 4294967294, %s986_s15   ;;  %s986_s15 = sphi %s1028_s15, %s1521_s15   ;;  %s982_s14 = sphi %s1026_s14, %s1520_s14   ;;  %s978_s13 = sphi %s1024_s13, %s1519_s13   ;;  %s974_s12 = sphi %s1022_s12, %s1518_s12  }
   0x8   : > { %p83_p0 = scmp.ne.s32.totalorder %s978_s13, %s974_s12  ;;  %p1500_p1 = scmp.eq.s32.totalorder %s1043_s16, 0 }
   0x9   : > { %p113_p3 = scmp.eq.s32.totalorder %s716_s17, 1  ;;  %p717_p5 = scmp.ge.s32.totalorder %s986_s15, 1 }
   0xa   : > { %p1052_p4 = por %p1500_p1, %p83_p0  ;;  %p120_p7 = scmp.lt.s32.totalorder %s986_s15, 3 }
   0xb   : > { %p1057_p6 = por %p113_p3, %p83_p0  ;;  %s988_s21 = smov [#allocation6]  }
   0xc   : > { %s1503_s18 = scalar_select %p1052_p4, 1, 0 }
   0xd   : > { %s1504_s19 = scalar_select %p1057_p6, 1, 0 }
   0xe   : > { %p1062_p8 = pnand %p717_p5, %p120_p7  ;;  %s141_s22 = sshll.u32 %s988_s21, 4  ;;  %s1069_s22 = int_to_ptr.vmem [resolvable:$true] %s141_s22 }
   0xf   : > { %s1078_s24 = sadd.s32 1, %s986_s15   ;;  %s841_s28 = scalar_lea.hbm %s1496_s0, 16 }
  0x10   : > { %p767_p10 = pneg %p1062_p8  ;;  %s67_s25 = ssub.s32 %s986_s15, %s1078_s24 }
  0x11   : > { %p842_p12 = scmp.ne.s32.totalorder %s1496_s0, %s841_s28  ;;  %p848_p5 = scmp.lt.u32.totalorder %s841_s28, %s1496_s0 }
  0x12   : > { %p1073_p11 = pnand %p767_p10, %p1500_p1 }
  0x14   : > { %p843_p13 = pneg %p1073_p11 }
  0x16   : > { %p844_p0 = pnand %p843_p13, %p842_p12 }
  0x18   : > { %p845_p3 = pneg %p844_p0 }
  0x1a   : > { %p850_p7 = pnand %p848_p5, %p845_p3 }
  0x1c   : > { %853 = shalt.err (!%p850_p7)
}
  0x1d   : > { %s989_s6 = smov [#allocation2]   ;;  %s854_s11 = scalar_lea.hbm %s1497_s1, 512 }
  0x1e   : > { %770 = dma.hbm_to_smem (!%p1073_p11), %s1496_s0, 16, %s989_s6, [#allocation5]  }
  0x1f   : > { %p855_p10 = scmp.ne.s32.totalorder %s1497_s1, %s854_s11  ;;  %p861_p3 = scmp.lt.u32.totalorder %s854_s11, %s1497_s1 }
  0x21   : > { %p857_p12 = pnand %p855_p10, %p843_p13 }
  0x23   : > { %p858_p0 = pneg %p857_p12 }
  0x25   : > { %p863_p5 = pnand %p861_p3, %p858_p0 }
  0x27   : > { %866 = shalt.err (!%p863_p5)
}
  0x28   : > { %s867_s28 = scalar_lea.vmem %s1069_s22, 512  ;;  %p875_p2 = scmp.lt.s32.totalorder %s1069_s22, %s1069_s22 }
  0x29   : > { %p868_p7 = scmp.ne.s32.totalorder %s1069_s22, %s867_s28  ;;  %p876_p10 = scmp.lt.s32.totalorder %s867_s28, %s867_s28 }
  0x2b   : > { %p870_p9 = pnand %p868_p7, %p843_p13  ;;  %p877_p12 = por %p876_p10, %p875_p2 }
  0x2d   : > { %p871_p1 = pneg %p870_p9 }
  0x2f   : > { %p878_p6 = pnand %p877_p12, %p871_p1 }
  0x31   : > { %881 = shalt.err (!%p878_p6)
}
  0x32   : > { %s990_s29 = smov 256   ;;  %s991_s30 = smov 16  }
  0x33   : > { %773 = dma.hbm_to_vmem [thread:$0]  (!%p1073_p11), %s1497_s1, 512, %s1069_s22, [#allocation3], %s990_s29, %s990_s29, %s991_s30  }
  0x34   : > { %p68_p1 = scmp.eq.s32.totalorder %s67_s25, 0  ;;  %s70_s6 = sadd.s32 1, %s982_s14 }
  0x35   : > { %p77_p2 = scmp.ne.s32.totalorder %s982_s14, %s978_s13  ;;  %p78_p6 = scmp.eq.s32.totalorder %s986_s15, 0 }
  0x36   : > { %s1134_s7 = scalar_select %p68_p1, %s982_s14, %s70_s6  }
  0x37   : > { %p79_p9 = por %p78_p6, %p77_p2  ;;  %p1507_p13 = scmp.eq.s32.totalorder %s1043_s16, 1 }
  0x38   : > { %p784_p3 = scmp.lt.s32.totalorder %s986_s15, 2  ;;  %s155_s9 = sand.u32 1, %s982_s14  }
  0x39   : > { %p1138_p0 = por %p1507_p13, %p77_p2  ;;  %s721_s23 = sshll.u32 %s155_s9, 3 }
  0x3a   : > { %s753_s10 = sshll.u32 %s986_s15, 7  ;;  %s159_s25 = scalar_lea.vmem [#allocation7], %s721_s23 }
  0x3b   : > { %s1508_s8 = scalar_select %p1138_p0, 1, 0 }
  0x3c   : > { %s1148_s22 = scalar_lea.hbm %s1498_s2, %s753_s10  ;;  %s167_s21 = sshll.u32 %s159_s25, 4  ;;  %s1150_s21 = int_to_ptr.vmem [resolvable:$true] %s167_s21 }
  0x3d   : > { %p1152_p11 = pnand %p784_p3, %p79_p9  ;;  %s156_s27 = scalar_lea.sflag [#allocation8], %s155_s9 }
  0x3e   : > { %s882_s28 = scalar_lea.hbm %s1148_s22, 128  ;;  %s887_s4 = scalar_lea.hbm %s1498_s2, 256 }
  0x3f   : > { %p883_p5 = scmp.ne.s32.totalorder %s1148_s22, %s882_s28  ;;  %p884_p7 = pneg %p1152_p11 }
  0x40   : > { %p888_p1 = scmp.lt.u32.totalorder %s1148_s22, %s1498_s2  ;;  %p889_p2 = scmp.lt.u32.totalorder %s887_s4, %s882_s28 }
  0x41   : > { %p885_p10 = pnand %p884_p7, %p883_p5  ;;  %p891_p9 = scmp.lt.u32.totalorder %s882_s28, %s1148_s22 }
  0x42   : > { %p890_p6 = por %p889_p2, %p888_p1 }
  0x43   : > { %p886_p12 = pneg %p885_p10 }
  0x44   : > { %p892_p13 = por %p891_p9, %p890_p6 }
  0x46   : > { %p893_p3 = pnand %p892_p13, %p886_p12 }
  0x48   : > { %896 = shalt.err (!%p893_p3)
}
  0x49   : > { %s897_s9 = scalar_lea.vmem %s1150_s21, 128  ;;  %s992_s23 = smov [#allocation7]  }
  0x4a   : > { %p898_p5 = scmp.ne.s32.totalorder %s1150_s21, %s897_s9  ;;  %s902_s10 = sshll.u32 %s992_s23, 4  ;;  %s903_s10 = int_to_ptr.vmem [resolvable:$false] %s902_s10 }
  0x4b   : > { %s904_s11 = scalar_lea.vmem %s903_s10, 256  ;;  %p905_p4 = scmp.lt.s32.totalorder %s1150_s21, %s903_s10 }
  0x4c   : > { %p900_p10 = pnand %p898_p5, %p884_p7  ;;  %p906_p1 = scmp.lt.s32.totalorder %s904_s11, %s897_s9 }
  0x4e   : > { %p901_p0 = pneg %p900_p10  ;;  %p907_p2 = por %p906_p1, %p905_p4 }
  0x50   : > { %p908_p6 = pnand %p907_p2, %p901_p0 }
  0x52   : > { %911 = shalt.err (!%p908_p6)
}
  0x53   : > { %777 = dma.hbm_to_vmem [thread:$0]  (!%p1152_p11), %s1148_s22, 128, %s1150_s21, %s156_s27  }
  0x54   : > { %176 = sbr.rel (%p1062_p8) target bundleno = 346 (0x15a), region = 32  ;;  %p1510_p7 = scmp.eq.s32.totalorder (!%p1062_p8), %s1043_s16, 0 }
  0x5b   : > { %957 = dma.done.wait (%p1510_p7), [#allocation5], 16   ;;  %p1511_p12 = pmov %p1510_p7 }
  0x5c   : > { %p1512_p9 = pmov %p1510_p7 }
  0x5d   : > { %959 = vsyncadd (%p1511_p12), [#allocation5], 4294967280 }
  0x5e   : > { %961 = dma.done.wait (%p1512_p9), [#allocation3], 512   ;;  %p1513_p4 = pmov %p1510_p7 }
  0x5f   : > { %s1192_s17 = sand.u32 1, %s978_s13   ;;  %p1514_p8 = scmp.ne.s32.totalorder %s1503_s18, 0 }
  0x60   : > { %963 = vsyncadd (%p1513_p4), [#allocation3], 4294966784  ;;  %s727_s20 = sshll.u32 %s1192_s17, 3  ;;  %s187_s22 = scalar_lea.sflag [#allocation8], %s1192_s17 }
  0x61   : > { %s190_s25 = scalar_lea.vmem [#allocation7], %s727_s20 }
  0x62   : > { %965 = dma.done.wait (%p1514_p8), %s187_s22, 128  }
  0x63   : > { %967 = vsyncadd (%p1514_p8), %s187_s22, 4294967168 }
  0x64   : > { %195 = sfence }
  0x65   : > { %v1202_v0 = vld [vmem:[%s190_s25] sm:$0xff]  ;;  %vm218_vm0 = vcmask 1043456   ;;  %s993_s18 = smov 17   ;;  %s994_s21 = smov 16   ;;  %v251_v48 = vlaneseq }
  0x66   : > { %v233_v1 = vsel %vm218_vm0, %v1202_v0, 0.0  ;;  %v219_v2 = vsel %vm218_vm0, %v1202_v0, -inf  ;;  %v1208_v3 = vcombine.high %v1202_v0, %v1202_v0  ;;  %s995_s26 = smov 15   ;;  %s736_s27 = sld [smem:[#allocation2 + $0x4]] }
  0x67   : > { %v234_v4 = vrot.slane %v233_v1, 4  ;;  %v220_v5 = vrot.slane %v219_v2, 4  ;;  %s737_s28 = sld [smem:[#allocation2 + $0xd]]  ;;  %s996_s29 = smov 1   ;;  %v275_v51 = vshrl.u32 %v251_v48, 7  ;;  %v1232_v52 = vand.u32 127, %v251_v48 }
  0x68   : > { %v240_v6 = vsel %vm218_vm0, %v1208_v3, 0.0  ;;  %v226_v7 = vsel %vm218_vm0, %v1208_v3, -inf  ;;  %s997_s30 = smov 127   ;;  %s998_s4 = smov 113  }
  0x69   : > { %v235_v8 = vadd.f32 %v234_v4, %v233_v1  ;;  %v221_v9 = vmax.f32 %v219_v2, %v220_v5  ;;  %v241_v10 = vrot.slane %v240_v6, 4  ;;  %v227_v11 = vrot.slane %v226_v7, 4  ;;  %s999_s5 = smov 112   ;;  %s1000_s6 = smov 111  }
  0x6a   : > { %s1220_s9 = sld [smem:[#allocation2 + $0x9]]  ;;  %s1224_s10 = sld [smem:[#allocation2 + $0xa]]  ;;  %v1240_v55 = vsub.s32 0, %v275_v51  ;;  %v1242_v56 = vsub.s32 1, %v275_v51  ;;  %vm253_vm1 = vcmp.lt.s32.totalorder %v1232_v52, 17  ;;  %vm292_vm2 = vcmp.lt.s32.totalorder %v1232_v52, 16 }
  0x6b   : > { %v236_v12 = vrot.slane %v235_v8, 2  ;;  %v222_v13 = vrot.slane %v221_v9, 2  ;;  %v242_v14 = vadd.f32 %v241_v10, %v240_v6  ;;  %v228_v15 = vmax.f32 %v226_v7, %v227_v11  ;;  %s1222_s23 = sld [smem:[#allocation2 + $0x1]]  ;;  %s1226_s11 = sld [smem:[#allocation2 + $0x2]] }
  0x6c   : > { %v409_v30 = vstv %s736_s27  ;;  %s1228_s22 = sld [smem:[#allocation2]]  ;;  %s1230_s25 = sld [smem:[#allocation2 + $0xb]]  ;;  %v1244_v57 = vld [vmem:[#allocation6 + $0x1] ss:$8 sm:$0x3]  ;;  %vm332_vm3 = vcmp.lt.s32.totalorder %v1232_v52, 15 }
  0x6d   : > { %v237_v16 = vadd.f32 %v236_v12, %v235_v8  ;;  %v223_v17 = vmax.f32 %v221_v9, %v222_v13  ;;  %v243_v18 = vrot.slane %v242_v14, 2  ;;  %v229_v19 = vrot.slane %v228_v15, 2  ;;  %v1251_v58 = vld [vmem:[#allocation6] ss:$8 sm:$0x3]  ;;  %s1299_s27 = sld [smem:[#allocation2 + $0xe]] }
  0x6e   : > { %v413_v31 = vstv %s737_s28  ;;  %v1257_v62 = vld [vmem:[#allocation6 + $0x2] ss:$8 sm:$0x3]  ;;  %v317_v2 = vrot.slane %v1244_v57, %v1240_v55  ;;  %v321_v4 = vrot.slane %v1244_v57, %v1242_v56  ;;  %v1265_v6 = vld [vmem:[#allocation6 + $0x3] ss:$8 sm:$0x3]  ;;  %v277_v8 = vrot.slane %v1251_v58, %v1240_v55 }
  0x6f   : > { %v238_v20 = vrot.slane %v237_v16, 1  ;;  %v224_v21 = vrot.slane %v223_v17, 1  ;;  %v244_v22 = vadd.f32 %v243_v18, %v242_v14  ;;  %v230_v23 = vmax.f32 %v228_v15, %v229_v19  ;;  %s1324_s28 = sld [smem:[#allocation2 + $0x6]]  ;;  %p1515_p11 = scmp.ne.s32.totalorder %s1508_s8, 0 }
  0x70   : > { %v267_v59 = vstv %s1220_s9  ;;  %v306_v61 = vstv %s1224_s10  ;;  %v281_v9 = vrot.slane %v1251_v58, %v1242_v56  ;;  %v357_v11 = vrot.slane %v1257_v62, %v1240_v55  ;;  %s754_s9 = sshll.u32 %s1043_s16, 7  ;;  %s1001_s16 = smov [#allocation9]  }
  0x71   : > { %v239_v24 = vadd.f32 %v238_v20, %v237_v16  ;;  %v225_v25 = vmax.f32 %v223_v17, %v224_v21  ;;  %v245_v26 = vrot.slane %v244_v22, 1  ;;  %v231_v28 = vrot.slane %v230_v23, 1 }
  0x72   : > { %v302_v60 = vstv %s1222_s23  ;;  %v342_v5 = vstv %s1226_s11  ;;  %v263_v7 = vstv %s1228_s22  ;;  %v346_v10 = vstv %s1230_s25  ;;  %s213_s23 = scalar_lea.vmem [#allocation9], %s727_s20  ;;  %s1452_s25 = scalar_lea.hbm %s1499_s3, %s754_s9 }
  0x73   : > { %256 = vrot.lane.b32.xlu1 %v239_v24, %s993_s18  ;;  %247 = vrot.lane.b32.xlu0 %v225_v25, %s993_s18  ;;  %v246_v27 = vadd.f32 %v245_v26, %v244_v22  ;;  %v232_v29 = vmax.f32 %v230_v23, %v231_v28  ;;  %v410_v32 = vmul.f32 %v409_v30, %v225_v25  ;;  %vm372_vm4 = vcmp.lt.s32.totalorder %v1232_v52, 1  ;;  %s622_s10 = sshll.u32 %s213_s23, 4  ;;  %s916_s20 = sshll.u32 %s1001_s16, 4  ;;  %s1454_s10 = int_to_ptr.vmem [resolvable:$true] %s622_s10  ;;  %s917_s20 = int_to_ptr.vmem [resolvable:$false] %s916_s20 }
  0x74   : > { %v414_v33 = vmul.f32 %v413_v31, %v239_v24  ;;  %v361_v12 = vrot.slane %v1257_v62, %v1242_v56  ;;  %v397_v16 = vrot.slane %v1265_v6, %v1240_v55  ;;  %v401_v17 = vrot.slane %v1265_v6, %v1242_v56  ;;  %p919_p5 = scmp.lt.s32.totalorder %s1454_s10, %s917_s20 }
  0x75   : > { %v415_v34 = vmul.f32 %v413_v31, %v246_v27  ;;  %v411_v35 = vmul.f32 %v409_v30, %v232_v29  ;;  %vm424_vm5 = vcmp.lt.s32.totalorder %v1232_v52, 127  ;;  %vm464_vm6 = vcmp.lt.s32.totalorder %v1232_v52, 113 }
  0x76   : > { %v1212_v36 = vadd.f32 %v414_v33, %v410_v32  ;;  %vm504_vm7 = vcmp.lt.s32.totalorder %v1232_v52, 112  ;;  %vm544_vm8 = vcmp.lt.s32.totalorder %v1232_v52, 111 }
  0x77   : > { %288 = vrot.lane.b32.xlu0 %v225_v25, %s994_s21  ;;  %258 = vrot.lane.b32.xlu1 %v246_v27, %s993_s18  ;;  %v1214_v37 = vadd.f32 %v415_v34, %v411_v35 }
  0x7b   : > { %295 = vrot.lane.b32.xlu0 %v239_v24, %s994_s21  ;;  %290 = vrot.lane.b32.xlu1 %v232_v29, %s994_s21 }
  0x7f   : > { %328 = vrot.lane.b32.xlu0 %v225_v25, %s995_s26  ;;  %297 = vrot.lane.b32.xlu1 %v246_v27, %s994_s21  ;;  %s1246_s21 = sld [smem:[#allocation2 + $0xc]] }
  0x83   : > { %330 = vrot.lane.b32.xlu1 %v232_v29, %s995_s26  ;;  %249 = vrot.lane.b32.xlu0 %v232_v29, %s993_s18  ;;  %s1234_s18 = sld [smem:[#allocation2 + $0x3]] }
  0x85   : > { %v386_v26 = vstv %s1246_s21  ;;  %s912_s21 = scalar_lea.vmem %s1454_s10, 128 }
  0x86   : > { %p913_p0 = scmp.ne.s32.totalorder %s1454_s10, %s912_s21 }
  0x87   : > { %337 = vrot.lane.b32.xlu1 %v246_v27, %s995_s26  ;;  %335 = vrot.lane.b32.xlu0 %v239_v24, %s995_s26  ;;  %s1248_s26 = sld [smem:[#allocation2 + $0x5]] }
  0x88   : > { %p914_p13 = pnand %p913_p0, %p1515_p11 }
  0x89   : > { %v382_v13 = vstv %s1234_s18  ;;  %s608_s18 = scalar_lea.sflag [#allocation4], %s1192_s17 }
  0x8a   : > { %p915_p3 = pneg %p914_p13 }
  0x8b   : > { %370 = vrot.lane.b32.xlu1 %v232_v29, %s996_s29  ;;  %368 = vrot.lane.b32.xlu0 %v225_v25, %s996_s29 }
  0x8f   : > { %377 = vrot.lane.b32.xlu1 %v246_v27, %s996_s29  ;;  %375 = vrot.lane.b32.xlu0 %v239_v24, %s996_s29  ;;  %s1336_s29 = sld [smem:[#allocation2 + $0xf]] }
  0x93   : > { %422 = vrot.lane.b32.xlu1 %v232_v29, %s997_s30  ;;  %420 = vrot.lane.b32.xlu0 %v225_v25, %s997_s30 }
  0x97   : > { %429 = vrot.lane.b32.xlu1 %v246_v27, %s997_s30  ;;  %427 = vrot.lane.b32.xlu0 %v239_v24, %s997_s30  ;;  %s1343_s30 = sld [smem:[#allocation2 + $0x7]] }
  0x9b   : > { %462 = vrot.lane.b32.xlu1 %v232_v29, %s998_s4  ;;  %460 = vrot.lane.b32.xlu0 %v225_v25, %s998_s4 }
  0x9f   : > { %469 = vrot.lane.b32.xlu1 %v246_v27, %s998_s4  ;;  %467 = vrot.lane.b32.xlu0 %v239_v24, %s998_s4  ;;  %s1345_s4 = sld [smem:[#allocation2 + $0x10]] }
  0xa3   : > { %502 = vrot.lane.b32.xlu1 %v232_v29, %s999_s5  ;;  %500 = vrot.lane.b32.xlu0 %v225_v25, %s999_s5 }
  0xa7   : > { %509 = vrot.lane.b32.xlu1 %v246_v27, %s999_s5  ;;  %507 = vrot.lane.b32.xlu0 %v239_v24, %s999_s5  ;;  %s1401_s5 = sld [smem:[#allocation2 + $0x8]] }
  0xab   : > { %542 = vrot.lane.b32.xlu1 %v232_v29, %s1000_s6  ;;  %540 = vrot.lane.b32.xlu0 %v225_v25, %s1000_s6 }
  0xaf   : > { %549 = vrot.lane.b32.xlu1 %v246_v27, %s1000_s6  ;;  %547 = vrot.lane.b32.xlu0 %v239_v24, %s1000_s6  ;;  %v434_v27 = vstv %s1248_s26  ;;  %s1407_s6 = sld [smem:[#allocation2 + $0x11]]  ;;  %s918_s26 = scalar_lea.vmem %s917_s20, 256 }
  0xb0   : > { %p920_p10 = scmp.lt.s32.totalorder %s918_s26, %s912_s21 }
  0xb2   : > { %p921_p1 = por %p920_p10, %p919_p5 }
  0xb4   : > { %p922_p2 = pnand %p921_p1, %p915_p3 }
  0xe5   : > { %v257_v38 = vpop.permute.xlu1 %256  ;;  %v248_v39 = vpop.permute.xlu0 %247 }
  0xe9   : > { %v289_v40 = vpop.permute.xlu0 %288  ;;  %v259_v41 = vpop.permute.xlu1 %258 }
  0xea   : > { %v260_v20 = vsel %vm253_vm1, %v257_v38, %v259_v41  ;;  %v261_v21 = vsel %vm253_vm1, %v259_v41, %v257_v38 }
  0xeb   : > { %v268_v32 = vmul.f32 %v267_v59, %v261_v21  ;;  %v269_v33 = vmul.f32 %v267_v59, %v260_v20  ;;  %v438_v20 = vstv %s1299_s27 }
  0xed   : > { %v296_v42 = vpop.permute.xlu0 %295  ;;  %v291_v43 = vpop.permute.xlu1 %290 }
  0xee   : > { %v293_v24 = vsel %vm292_vm2, %v289_v40, %v291_v43  ;;  %v294_v25 = vsel %vm292_vm2, %v291_v43, %v289_v40 }
  0xf1   : > { %v1216_v44 = vpop.permute.xlu0 %328  ;;  %v298_v45 = vpop.permute.xlu1 %297 }
  0xf2   : > { %v299_v22 = vsel %vm292_vm2, %v296_v42, %v298_v45  ;;  %v300_v23 = vsel %vm292_vm2, %v298_v45, %v296_v42  ;;  %v303_v45 = vmul.f32 %v302_v60, %v294_v25 }
  0xf3   : > { %v307_v34 = vmul.f32 %v306_v61, %v300_v23  ;;  %v308_v35 = vmul.f32 %v306_v61, %v299_v22  ;;  %v1341_v22 = vld [vmem:[#allocation6 + $0x6] ss:$8 sm:$0x3] }
  0xf5   : > { %v1218_v46 = vpop.permute.xlu1 %330  ;;  %v250_v47 = vpop.permute.xlu0 %249 }
  0xf6   : > { %v254_v14 = vsel %vm253_vm1, %v248_v39, %v250_v47  ;;  %v255_v15 = vsel %vm253_vm1, %v250_v47, %v248_v39  ;;  %v333_v40 = vsel %vm332_vm3, %v1216_v44, %v1218_v46  ;;  %v334_v41 = vsel %vm332_vm3, %v1218_v46, %v1216_v44 }
  0xf7   : > { %v264_v28 = vmul.f32 %v263_v7, %v255_v15  ;;  %v265_v29 = vmul.f32 %v263_v7, %v254_v14  ;;  %v304_v47 = vmul.f32 %v302_v60, %v293_v24  ;;  %v343_v60 = vmul.f32 %v342_v5, %v334_v41 }
  0xf8   : > { %v344_v61 = vmul.f32 %v342_v5, %v333_v40  ;;  %v309_v14 = vadd.f32 %v307_v34, %v303_v45 }
  0xf9   : > { %v338_v49 = vpop.permute.xlu1 %337  ;;  %v336_v50 = vpop.permute.xlu0 %335  ;;  %v270_v51 = vadd.f32 %v268_v32, %v264_v28  ;;  %v271_v59 = vadd.f32 %v269_v33, %v265_v29  ;;  %v310_v15 = vadd.f32 %v308_v35, %v304_v47  ;;  %v474_v32 = vstv %s1324_s28 }
  0xfa   : > { %v339_v30 = vsel %vm332_vm3, %v336_v50, %v338_v49  ;;  %v340_v31 = vsel %vm332_vm3, %v338_v49, %v336_v50  ;;  %v1326_v50 = vld [vmem:[#allocation6 + $0x5] ss:$8 sm:$0x3]  ;;  %v324_v58 = vmul.f32 %v317_v2, %v309_v14  ;;  %v489_v33 = vrot.slane %v1341_v22, %v1240_v55 }
  0xfb   : > { %v347_v48 = vmul.f32 %v346_v10, %v340_v31  ;;  %v348_v49 = vmul.f32 %v346_v10, %v339_v30  ;;  %v449_v21 = vrot.slane %v1326_v50, %v1240_v55  ;;  %v285_v5 = vmul.f32 %v281_v9, %v271_v59 }
  0xfc   : > { %v325_v9 = vmul.f32 %v321_v4, %v310_v15 }
  0xfd   : > { %v1236_v53 = vpop.permute.xlu1 %370  ;;  %v1238_v54 = vpop.permute.xlu0 %368  ;;  %v349_v23 = vadd.f32 %v347_v48, %v343_v60  ;;  %v350_v24 = vadd.f32 %v348_v49, %v344_v61  ;;  %v514_v49 = vstv %s1343_s30 }
  0xfe   : > { %v373_v44 = vsel %vm372_vm4, %v1238_v54, %v1236_v53  ;;  %v374_v46 = vsel %vm372_vm4, %v1236_v53, %v1238_v54  ;;  %v284_v54 = vmul.f32 %v277_v8, %v270_v51  ;;  %v327_v62 = vadd.f32 %v325_v9, %v285_v5 }
  0xff   : > { %v383_v25 = vmul.f32 %v382_v13, %v374_v46  ;;  %v384_v53 = vmul.f32 %v382_v13, %v373_v44  ;;  %v364_v34 = vmul.f32 %v357_v11, %v349_v23  ;;  %v365_v35 = vmul.f32 %v361_v12, %v350_v24  ;;  %v524_v23 = vld [vmem:[#allocation6 + $0x7] ss:$8 sm:$0x3] }
 0x100   : > { %v326_v11 = vadd.f32 %v324_v58, %v284_v54  ;;  %v529_v9 = vrot.slane %v524_v23, %v1240_v55 }
 0x101   : > { %v378_v63 = vpop.permute.xlu1 %377  ;;  %v376_v1 = vpop.permute.xlu0 %375  ;;  %v367_v48 = vadd.f32 %v365_v35, %v327_v62 }
 0x102   : > { %v379_v42 = vsel %vm372_vm4, %v376_v1, %v378_v63  ;;  %v380_v43 = vsel %vm372_vm4, %v378_v63, %v376_v1  ;;  %v366_v47 = vadd.f32 %v364_v34, %v326_v11 }
 0x103   : > { %v387_v63 = vmul.f32 %v386_v26, %v380_v43  ;;  %v388_v1 = vmul.f32 %v386_v26, %v379_v42  ;;  %v453_v26 = vrot.slane %v1326_v50, %v1242_v56 }
 0x105   : > { %v1287_v18 = vpop.permute.xlu1 %422  ;;  %v1289_v19 = vpop.permute.xlu0 %420  ;;  %v389_v28 = vadd.f32 %v387_v63, %v383_v25  ;;  %v390_v13 = vadd.f32 %v388_v1, %v384_v53  ;;  %v493_v53 = vrot.slane %v1341_v22, %v1242_v56 }
 0x106   : > { %v425_v57 = vsel %vm424_vm5, %v1289_v19, %v1287_v18  ;;  %v426_v2 = vsel %vm424_vm5, %v1287_v18, %v1289_v19 }
 0x107   : > { %v404_v12 = vmul.f32 %v397_v16, %v389_v28  ;;  %v405_v40 = vmul.f32 %v401_v17, %v390_v13  ;;  %v435_v18 = vmul.f32 %v434_v27, %v425_v57  ;;  %v436_v19 = vmul.f32 %v434_v27, %v426_v2  ;;  %v564_v28 = vld [vmem:[#allocation6 + $0x10] ss:$8 sm:$0x3] }
 0x108   : > { %v518_v16 = vstv %s1345_s4  ;;  %v569_v50 = vrot.slane %v564_v28, %v1240_v55 }
 0x109   : > { %v430_v38 = vpop.permute.xlu1 %429  ;;  %v428_v39 = vpop.permute.xlu0 %427  ;;  %v406_v1 = vadd.f32 %v404_v12, %v366_v47  ;;  %v407_v14 = vadd.f32 %v405_v40, %v367_v48 }
 0x10a   : > { %v431_v29 = vsel %vm424_vm5, %v428_v39, %v430_v38  ;;  %v432_v30 = vsel %vm424_vm5, %v430_v38, %v428_v39  ;;  %v478_v39 = vstv %s1336_s29 }
 0x10b   : > { %v439_v4 = vmul.f32 %v438_v20, %v431_v29  ;;  %v440_v38 = vmul.f32 %v438_v20, %v432_v30  ;;  %v418_v57 = vadd.f32 %v1212_v36, %v406_v1  ;;  %v419_v2 = vadd.f32 %v1214_v37, %v407_v14 }
 0x10d   : > { %v463_v7 = vpop.permute.xlu1 %462  ;;  %v461_v10 = vpop.permute.xlu0 %460  ;;  %v441_v6 = vadd.f32 %v439_v4, %v435_v18  ;;  %v442_v17 = vadd.f32 %v440_v38, %v436_v19  ;;  %v554_v4 = vstv %s1401_s5  ;;  %v558_v38 = vstv %s1407_s6 }
 0x10e   : > { %v465_v51 = vsel %vm464_vm6, %v461_v10, %v463_v7  ;;  %v466_v27 = vsel %vm464_vm6, %v463_v7, %v461_v10 }
 0x10f   : > { %v475_v10 = vmul.f32 %v474_v32, %v465_v51  ;;  %v476_v20 = vmul.f32 %v474_v32, %v466_v27  ;;  %v456_v13 = vmul.f32 %v449_v21, %v441_v6  ;;  %v457_v29 = vmul.f32 %v453_v26, %v442_v17 }
 0x110   : > { %v533_v32 = vrot.slane %v524_v23, %v1242_v56 }
 0x111   : > { %v470_v31 = vpop.permute.xlu1 %469  ;;  %v468_v8 = vpop.permute.xlu0 %467  ;;  %v458_v11 = vadd.f32 %v456_v13, %v418_v57  ;;  %v459_v62 = vadd.f32 %v457_v29, %v419_v2 }
 0x112   : > { %v471_v43 = vsel %vm464_vm6, %v468_v8, %v470_v31  ;;  %v472_v45 = vsel %vm464_vm6, %v470_v31, %v468_v8 }
 0x113   : > { %v479_v59 = vmul.f32 %v478_v39, %v471_v43  ;;  %v480_v44 = vmul.f32 %v478_v39, %v472_v45  ;;  %v573_v39 = vrot.slane %v564_v28, %v1242_v56 }
 0x115   : > { %v503_v41 = vpop.permute.xlu1 %502  ;;  %v501_v42 = vpop.permute.xlu0 %500  ;;  %v481_v30 = vadd.f32 %v479_v59, %v475_v10  ;;  %v482_v31 = vadd.f32 %v480_v44, %v476_v20 }
 0x116   : > { %v505_v46 = vsel %vm504_vm7, %v501_v42, %v503_v41  ;;  %v506_v60 = vsel %vm504_vm7, %v503_v41, %v501_v42 }
 0x117   : > { %v515_v54 = vmul.f32 %v514_v49, %v505_v46  ;;  %v516_v5 = vmul.f32 %v514_v49, %v506_v60  ;;  %v496_v36 = vmul.f32 %v489_v33, %v481_v30  ;;  %v497_v12 = vmul.f32 %v493_v53, %v482_v31 }
 0x119   : > { %v510_v61 = vpop.permute.xlu1 %509  ;;  %v508_v63 = vpop.permute.xlu0 %507  ;;  %v498_v48 = vadd.f32 %v496_v36, %v458_v11  ;;  %v499_v49 = vadd.f32 %v497_v12, %v459_v62 }
 0x11a   : > { %v511_v15 = vsel %vm504_vm7, %v508_v63, %v510_v61  ;;  %v512_v7 = vsel %vm504_vm7, %v510_v61, %v508_v63 }
 0x11b   : > { %v519_v24 = vmul.f32 %v518_v16, %v511_v15  ;;  %v520_v25 = vmul.f32 %v518_v16, %v512_v7 }
 0x11d   : > { %v543_v8 = vpop.permute.xlu1 %542  ;;  %v541_v58 = vpop.permute.xlu0 %540  ;;  %v521_v34 = vadd.f32 %v519_v24, %v515_v54  ;;  %v522_v35 = vadd.f32 %v520_v25, %v516_v5 }
 0x11e   : > { %v545_v21 = vsel %vm544_vm8, %v541_v58, %v543_v8  ;;  %v546_v26 = vsel %vm544_vm8, %v543_v8, %v541_v58 }
 0x11f   : > { %v536_v41 = vmul.f32 %v529_v9, %v521_v34  ;;  %v537_v42 = vmul.f32 %v533_v32, %v522_v35  ;;  %v555_v43 = vmul.f32 %v554_v4, %v545_v21  ;;  %v556_v45 = vmul.f32 %v554_v4, %v546_v26 }
 0x121   : > { %v550_v37 = vpop.permute.xlu1 %549  ;;  %v548_v40 = vpop.permute.xlu0 %547  ;;  %v538_v33 = vadd.f32 %v536_v41, %v498_v48  ;;  %v539_v6 = vadd.f32 %v537_v42, %v499_v49 }
 0x122   : > { %v551_v18 = vsel %vm544_vm8, %v548_v40, %v550_v37  ;;  %v552_v19 = vsel %vm544_vm8, %v550_v37, %v548_v40 }
 0x123   : > { %v559_v56 = vmul.f32 %v558_v38, %v551_v18  ;;  %v560_v47 = vmul.f32 %v558_v38, %v552_v19 }
 0x125   : > { %v561_v16 = vadd.f32 %v559_v56, %v555_v43  ;;  %v562_v22 = vadd.f32 %v560_v47, %v556_v45 }
 0x127   : > { %v576_v17 = vmul.f32 %v569_v50, %v561_v16  ;;  %v577_v51 = vmul.f32 %v573_v39, %v562_v22 }
 0x129   : > { %v578_v27 = vadd.f32 %v576_v17, %v538_v33  ;;  %v579_v59 = vadd.f32 %v577_v51, %v539_v6 }
 0x12b   : > { %v746_v44 = vmul.f32 -1.442695, %v578_v27  ;;  %v747_v46 = vmul.f32 -1.442695, %v579_v59 }
 0x12d   : > { %833 = vpow2.f32 %v746_v44 }
 0x12e   : > { %835 = vpow2.f32 %v747_v46 }
 0x137   : > { %v834_v52 = vpop.eup %833 }
 0x138   : > { %v836_v60 = vpop.eup %835  ;;  %v586_v61 = vadd.f32 1.0, %v834_v52 }
 0x139   : > { %v587_v63 = vadd.f32 1.0, %v836_v60 }
 0x13a   : > { %837 = vrcp.f32 %v586_v61 }
 0x13b   : > { %839 = vrcp.f32 %v587_v63 }
 0x144   : > { %v838_v1 = vpop.eup %837 }
 0x145   : > { %v840_v14 = vpop.eup %839  ;;  %v595_v15 = vrot.slane %v838_v1, %v1240_v55 }
 0x146   : > { %v599_v7 = vrot.slane %v840_v14, %v1240_v55 }
 0x147   : > { %v600_v10 = vmul.f32 %v595_v15, %v1202_v0 }
 0x148   : > { %v601_v20 = vmul.f32 %v599_v7, %v1208_v3 }
 0x14a   : > { %v604_v23 = vcombine.low %v600_v10, %v601_v20 }
 0x14c   : > { %606 = vst [vmem:[%s213_s23] sm:$0xff] %v604_v23 }
 0x14d   : > { %925 = shalt.err (!%p922_p2)
}
 0x14e   : > { %s926_s17 = scalar_lea.hbm %s1452_s25, 128  ;;  %s930_s29 = scalar_lea.hbm %s1499_s3, 256 }
 0x14f   : > { %p927_p6 = scmp.ne.s32.totalorder %s1452_s25, %s926_s17  ;;  %p931_p9 = scmp.lt.u32.totalorder %s1452_s25, %s1499_s3 }
 0x150   : > { %p932_p4 = scmp.lt.u32.totalorder %s930_s29, %s926_s17  ;;  %p934_p0 = scmp.lt.u32.totalorder %s926_s17, %s1452_s25 }
 0x151   : > { %p928_p7 = pnand %p927_p6, %p1515_p11 }
 0x152   : > { %p933_p8 = por %p932_p4, %p931_p9 }
 0x153   : > { %p929_p12 = pneg %p928_p7 }
 0x154   : > { %p935_p13 = por %p934_p0, %p933_p8 }
 0x156   : > { %p936_p3 = pnand %p935_p13, %p929_p12 }
 0x158   : > { %939 = shalt.err (!%p936_p3)
}
 0x159   : > { %765 = dma.vmem_to_hbm [thread:$0]  (%p1515_p11), %s1454_s10, 128, %s1452_s25, %s608_s18  }
 0x15a PF: > { %s634_s5 = sand.u32 1, %s974_s12   ;;  %p1516_p5 = scmp.ne.s32.totalorder %s1504_s19, 0 }
 0x15b   : > { %p1517_p10 = scmp.ge.s32.totalorder %s986_s15, 2  ;;  %s635_s6 = scalar_lea.sflag [#allocation4], %s634_s5 }
 0x15d   : > { %p779_p1 = pnand %p1517_p10, %p1516_p5 }
 0x15f   : > { %969 = dma.done.wait (!%p779_p1), %s635_s6, 128  }
 0x160   : > { %971 = vsyncadd (!%p779_p1), %s635_s6, 4294967168  ;;  %p18_p2 = scmp.ge.s32.totalorder %s1078_s24, 4   ;;  %s1518_s12 = smov %s978_s13 }
 0x161   : > { %s1519_s13 = smov %s982_s14  ;;  %s1520_s14 = smov %s1134_s7 }
 0x162   : > { %s1521_s15 = smov %s1078_s24  ;;  %20 = sbr.rel (!%p18_p2) target bundleno = 7 (0x7), region = 94 }
 0x169   :  { %640 = vsyncpa [#allocation3], 1 }
 0x16a   :  { %642 = vsyncpa [#allocation3 + $0x1], 1 }
 0x16b   :  { %643 = vsyncpa [#allocation8], 1 }
 0x16c   :  { %645 = vsyncpa [#allocation8 + $0x1], 1 }
 0x16d   :  { %646 = vsyncpa [#allocation4], 1 }
 0x16e   :  { %648 = vsyncpa [#allocation4 + $0x1], 1 }
 0x16f   :  { %649 = vsyncpa [#allocation5], 1 }
 0x170   :  { %651 = vsyncpa [#allocation5 + $0x1], 1 }

</bundles_post_ra>
